<compile_context>
chip_gen: v6e
topology: v6e:2x2x1
jax: 0.10.0
libtpu: 0.0.40
codegen_flags: <defaults>
</compile_context>

<pallas_src>
import functools

import numpy as np
import jax
import jax.numpy as jnp
from jax import lax
from jax.experimental import pallas as pl
from jax.experimental.pallas import tpu as pltpu

_VMEM_LIMIT = 32 * 1024 * 1024  # explicit scoped-VMEM budget (sized for v7x 64 MiB)


# ----------------------------------------------------------------------------
# helpers
# ----------------------------------------------------------------------------
def _ru(v, m):
    return (v + m - 1) // m * m


def _tile(dim, pref):
    """Block size + padded extent for one dim: full extent when small (no pad),
    otherwise a fixed aligned tile with zero padding."""
    if dim <= pref:
        return dim, dim
    return pref, _ru(dim, pref)


# ----------------------------------------------------------------------------
# Tiled matmul kernel (optional fused BN+ReLU prologue on x, optional out ReLU)
# ----------------------------------------------------------------------------
def _matmul_kernel(*refs, bn_in, relu_out, op_dtype):
    if bn_in:
        x_ref, sc_ref, sh_ref, w_ref, b_ref, o_ref, acc_ref = refs
    else:
        x_ref, w_ref, b_ref, o_ref, acc_ref = refs

    k = pl.program_id(2)

    @pl.when(k == 0)
    def _init():
        acc_ref[...] = jnp.zeros_like(acc_ref)

    x = x_ref[...]
    if bn_in:
        x = jnp.maximum(x.astype(jnp.float32) * sc_ref[...] + sh_ref[...], 0.0)
        x = x.astype(op_dtype)
    acc_ref[...] += jnp.dot(x, w_ref[...], preferred_element_type=jnp.float32)

    @pl.when(k == pl.num_programs(2) - 1)
    def _fin():
        y = acc_ref[...] + b_ref[...]
        if relu_out:
            y = jnp.maximum(y, 0.0)
        o_ref[...] = y.astype(o_ref.dtype)


def linear_pallas(x, w, b, *, scale=None, shift=None, relu_out=False,
                  out_dtype=jnp.float32, op_dtype=jnp.bfloat16,
                  tm_pref=512, tn_pref=512, tk_pref=512):
    """y = [relu(x*scale+shift)] @ w + b.  (M,N,K)-tiled, MXU, f32 accumulator.

    Full-extent blocks (no padding / extra copies) when a dim fits in one tile."""
    M, K = x.shape
    N = w.shape[1]
    bn_in = scale is not None

    tm, Mp = _tile(M, tm_pref)
    tk, Kp = _tile(K, tk_pref)
    tn, Np = _tile(N, tn_pref)

    x = x.astype(op_dtype)
    if (Mp, Kp) != (M, K):
        x = jnp.pad(x, ((0, Mp - M), (0, Kp - K)))
    w = w.astype(op_dtype)
    if (Kp, Np) != (K, N):
        w = jnp.pad(w, ((0, Kp - K), (0, Np - N)))
    b = b.astype(jnp.float32)
    if Np != N:
        b = jnp.pad(b, (0, Np - N))
    b = b.reshape(1, Np)

    ins = [x]
    in_specs = [pl.BlockSpec((tm, tk), lambda i, j, k: (i, k))]
    if bn_in:
        sc = scale.astype(jnp.float32).reshape(1, K)
        sh = shift.astype(jnp.float32).reshape(1, K)
        if Kp != K:
            sc = jnp.pad(sc, ((0, 0), (0, Kp - K)))
            sh = jnp.pad(sh, ((0, 0), (0, Kp - K)))
        ins += [sc, sh]
        in_specs += [pl.BlockSpec((1, tk), lambda i, j, k: (0, k)),
                     pl.BlockSpec((1, tk), lambda i, j, k: (0, k))]
    ins += [w, b]
    in_specs += [pl.BlockSpec((tk, tn), lambda i, j, k: (k, j)),
                 pl.BlockSpec((1, tn), lambda i, j, k: (0, j))]

    out = pl.pallas_call(
        functools.partial(_matmul_kernel, bn_in=bn_in, relu_out=relu_out,
                          op_dtype=op_dtype),
        grid=(Mp // tm, Np // tn, Kp // tk),
        in_specs=in_specs,
        out_specs=pl.BlockSpec((tm, tn), lambda i, j, k: (i, j)),
        out_shape=jax.ShapeDtypeStruct((Mp, Np), out_dtype),
        scratch_shapes=[pltpu.VMEM((tm, tn), jnp.float32)],
        compiler_params=pltpu.CompilerParams(
            dimension_semantics=("parallel", "parallel", "arbitrary"),
            vmem_limit_bytes=_VMEM_LIMIT),
    )(*ins)
    if (Mp, Np) != (M, N):
        out = out[:M, :N]
    return out


# ----------------------------------------------------------------------------
# 3x3 conv (pad=1, no bias), Cin/Cout tiled, f32 VMEM accumulator + BN partials
# ----------------------------------------------------------------------------
def _conv3x3_kernel(x_ref, w_ref, o_ref, sum_ref, ssq_ref, acc_ref, *, H, W):
    c = pl.program_id(2)

    @pl.when(c == 0)
    def _init():
        acc_ref[...] = jnp.zeros_like(acc_ref)

    cin = x_ref.shape[-1]
    for t in range(9):
        ky, kx = divmod(t, 3)
        xs = x_ref[0, ky:ky + H, kx:kx + W, :]                # (H, W, tcin) bf16
        acc_ref[...] += jnp.dot(xs.reshape(H * W, cin), w_ref[t],
                                preferred_element_type=jnp.float32)

    @pl.when(c == pl.num_programs(2) - 1)
    def _fin():
        acc = acc_ref[...]
        o_ref[0] = acc.reshape(H, W, acc.shape[-1]).astype(o_ref.dtype)
        sum_ref[0] = jnp.sum(acc, axis=0, keepdims=True)
        ssq_ref[0] = jnp.sum(acc * acc, axis=0, keepdims=True)


def conv3x3_stats(x_nhwc, w, eps=1e-5, tcin_pref=256, tcout_pref=256):
    """Returns (raw conv bf16 (N,H,W,Cout), BN scale (Cout,), BN shift (Cout,)).

    BN uses global batch statistics over N*H*W (weight=1, bias=0)."""
    N, H, W_, Cin = x_nhwc.shape
    Cout = w.shape[0]
    tcin, Cinp = _tile(Cin, tcin_pref)
    tcout, Coutp = _tile(Cout, tcout_pref)

    wt = jnp.transpose(w, (2, 3, 1, 0)).reshape(9, Cin, Cout).astype(jnp.bfloat16)
    if (Cinp, Coutp) != (Cin, Cout):
        wt = jnp.pad(wt, ((0, 0), (0, Cinp - Cin), (0, Coutp - Cout)))
    xp = jnp.pad(x_nhwc.astype(jnp.bfloat16),
                 ((0, 0), (1, 1), (1, 1), (0, Cinp - Cin)))

    y, s, ss = pl.pallas_call(
        functools.partial(_conv3x3_kernel, H=H, W=W_),
        grid=(N, Coutp // tcout, Cinp // tcin),
        in_specs=[
            pl.BlockSpec((1, H + 2, W_ + 2, tcin), lambda n, j, c: (n, 0, 0, c)),
            pl.BlockSpec((9, tcin, tcout), lambda n, j, c: (0, c, j)),
        ],
        out_specs=(pl.BlockSpec((1, H, W_, tcout), lambda n, j, c: (n, 0, 0, j)),
                   pl.BlockSpec((1, 1, tcout), lambda n, j, c: (n, 0, j)),
                   pl.BlockSpec((1, 1, tcout), lambda n, j, c: (n, 0, j))),
        out_shape=(jax.ShapeDtypeStruct((N, H, W_, Coutp), jnp.bfloat16),
                   jax.ShapeDtypeStruct((N, 1, Coutp), jnp.float32),
                   jax.ShapeDtypeStruct((N, 1, Coutp), jnp.float32)),
        scratch_shapes=[pltpu.VMEM((H * W_, tcout), jnp.float32)],
        compiler_params=pltpu.CompilerParams(
            dimension_semantics=("parallel", "parallel", "arbitrary"),
            vmem_limit_bytes=_VMEM_LIMIT),
    )(xp, wt)

    cnt = float(N * H * W_)
    mean = jnp.sum(s, axis=(0, 1)) / cnt
    var = jnp.maximum(jnp.sum(ss, axis=(0, 1)) / cnt - mean * mean, 0.0)
    scale = lax.rsqrt(var + eps)
    shift = -mean * scale
    if Coutp != Cout:
        y, scale, shift = y[..., :Cout], scale[:Cout], shift[:Cout]
    return y, scale, shift


# ----------------------------------------------------------------------------
# Position Attention Module: flash-attention kernel (BN+residual fused in)
# ----------------------------------------------------------------------------
def _pam_flash_kernel(q_ref, k_ref, v_ref, xr_ref, sc_ref, sh_ref, gamma_ref,
                      o_ref, m_sc, l_sc, acc_sc, *, kv_tile, seq_len, need_mask):
    ki = pl.program_id(2)

    @pl.when(ki == 0)
    def _init():
        m_sc[...] = jnp.full_like(m_sc, -jnp.inf)
        l_sc[...] = jnp.zeros_like(l_sc)
        acc_sc[...] = jnp.zeros_like(acc_sc)

    s = lax.dot_general(q_ref[0], k_ref[0], (((1,), (1,)), ((), ())),
                        preferred_element_type=jnp.float32)          # (tq, tkv)
    if need_mask:
        col = lax.broadcasted_iota(jnp.int32, s.shape, 1) + ki * kv_tile
        s = jnp.where(col < seq_len, s, -jnp.inf)

    m_prev = m_sc[...]
    m_new = jnp.maximum(m_prev, jnp.max(s, axis=-1, keepdims=True))
    alpha = jnp.exp(m_prev - m_new)
    p = jnp.exp(s - m_new)
    l_sc[...] = alpha * l_sc[...] + jnp.sum(p, axis=-1, keepdims=True)
    acc_sc[...] = alpha * acc_sc[...] + jnp.dot(
        p.astype(jnp.bfloat16), v_ref[0], preferred_element_type=jnp.float32)
    m_sc[...] = m_new

    @pl.when(ki == pl.num_programs(2) - 1)
    def _fin():
        attn = acc_sc[...] * pl.reciprocal(l_sc[...], approx=True)
        x_bn = jnp.maximum(xr_ref[0].astype(jnp.float32) * sc_ref[...]
                           + sh_ref[...], 0.0)
        o_ref[0] = (gamma_ref[0] * attn + x_bn).astype(o_ref.dtype)


def pam_attention(a_raw_seq, scale, shift, wq, bq, wk, bk, wv, bv, gamma,
                  tq_pref=256, tkv_pref=512):
    """a_raw_seq: raw conv2pam output (N, HW, C) bf16.  BN+ReLU fused inside."""
    N, HW, C = a_raw_seq.shape
    C8 = wq.shape[0]
    C8p = _ru(C8, 128)                       # lane-dense q/k feature dim

    wq_p = jnp.pad(wq.T.astype(jnp.float32), ((0, 0), (0, C8p - C8)))
    wk_p = jnp.pad(wk.T.astype(jnp.float32), ((0, 0), (0, C8p - C8)))
    w_qkv = jnp.concatenate([wq_p, wk_p, wv.T.astype(jnp.float32)], axis=1)
    b_qkv = jnp.concatenate([jnp.pad(bq, (0, C8p - C8)),
                             jnp.pad(bk, (0, C8p - C8)), bv])

    if HW <= tkv_pref:
        tq = tkv = HWp = HW
    else:
        tq, tkv = tq_pref, tkv_pref
        HWp = _ru(HW, tkv)
    need_mask = HWp != HW

    a = a_raw_seq
    if need_mask:
        a = jnp.pad(a, ((0, 0), (0, HWp - HW), (0, 0)))

    # fused q/k/v projection, BN+ReLU applied in the matmul prologue
    qkv = linear_pallas(a.reshape(N * HWp, C), w_qkv, b_qkv,
                        scale=scale, shift=shift, out_dtype=jnp.bfloat16)
    q = qkv[:, :C8p].reshape(N, HWp, C8p)
    k = qkv[:, C8p:2 * C8p].reshape(N, HWp, C8p)
    v = qkv[:, 2 * C8p:].reshape(N, HWp, C)

    sc2 = scale.astype(jnp.float32).reshape(1, C)
    sh2 = shift.astype(jnp.float32).reshape(1, C)

    out = pl.pallas_call(
        functools.partial(_pam_flash_kernel, kv_tile=tkv, seq_len=HW,
                          need_mask=need_mask),
        grid=(N, HWp // tq, HWp // tkv),
        in_specs=[
            pl.BlockSpec((1, tq, C8p), lambda n, qi, ki: (n, qi, 0)),
            pl.BlockSpec((1, tkv, C8p), lambda n, qi, ki: (n, ki, 0)),
            pl.BlockSpec((1, tkv, C), lambda n, qi, ki: (n, ki, 0)),
            pl.BlockSpec((1, tq, C), lambda n, qi, ki: (n, qi, 0)),
            pl.BlockSpec((1, C), lambda n, qi, ki: (0, 0)),
            pl.BlockSpec((1, C), lambda n, qi, ki: (0, 0)),
            pl.BlockSpec(memory_space=pltpu.MemorySpace.SMEM),
        ],
        out_specs=pl.BlockSpec((1, tq, C), lambda n, qi, ki: (n, qi, 0)),
        out_shape=jax.ShapeDtypeStruct((N, HWp, C), jnp.bfloat16),
        scratch_shapes=[pltpu.VMEM((tq, 1), jnp.float32),
                        pltpu.VMEM((tq, 1), jnp.float32),
                        pltpu.VMEM((tq, C), jnp.float32)],
        compiler_params=pltpu.CompilerParams(
            dimension_semantics=("parallel", "parallel", "arbitrary"),
            vmem_limit_bytes=_VMEM_LIMIT),
    )(q, k, v, a, sc2, sh2, gamma.astype(jnp.float32))
    return out[:, :HW] if need_mask else out


# ----------------------------------------------------------------------------
# Channel Attention Module: chunked energy / softmax / apply
# ----------------------------------------------------------------------------
def _cam_energy_kernel(xt_ref, x_ref, e_ref):
    h = pl.program_id(1)

    @pl.when(h == 0)
    def _init():
        e_ref[...] = jnp.zeros_like(e_ref)

    # canonical (C, thw) x (thw, C) MXU matmul: contraction over the lane axis
    e_ref[0] += jnp.dot(xt_ref[0], x_ref[0], preferred_element_type=jnp.float32)


def _cam_softmax_kernel(e_ref, a_ref):
    e = e_ref[0]                                            # (C, C) f32
    en = jnp.max(e, axis=-1, keepdims=True) - e
    m = jnp.max(en, axis=-1, keepdims=True)
    p = jnp.exp(en - m)
    att = p * pl.reciprocal(jnp.sum(p, axis=-1, keepdims=True), approx=True)
    a_ref[0] = att.astype(a_ref.dtype)


def _cam_apply_kernel(attT_ref, x_ref, gamma_ref, o_ref):
    x = x_ref[0]                                            # (thw, C) bf16
    out = jnp.dot(x, attT_ref[0], preferred_element_type=jnp.float32)
    o_ref[0] = (gamma_ref[0] * out + x.astype(jnp.float32)).astype(o_ref.dtype)


def cam_attention(c_raw_seq, scale, shift, gamma, thw_pref=512):
    """c_raw_seq: raw conv2cam output (N, HW, C) bf16.  Returns (N, HW, C) bf16."""
    N, HW, C = c_raw_seq.shape
    # BN+ReLU materialized once (bf16) — needed for the transposed energy operand
    x = jnp.maximum(c_raw_seq.astype(jnp.float32) * scale.reshape(1, 1, C)
                    + shift.reshape(1, 1, C), 0.0).astype(jnp.bfloat16)
    if HW <= thw_pref:
        thw, HWp = HW, HW
    else:
        thw, HWp = thw_pref, _ru(HW, thw_pref)
    if HWp != HW:
        x = jnp.pad(x, ((0, 0), (0, HWp - HW), (0, 0)))     # exact zeros: safe
    xt = jnp.swapaxes(x, 1, 2)                               # (N, C, HWp)

    energy = pl.pallas_call(
        _cam_energy_kernel,
        grid=(N, HWp // thw),
        in_specs=[pl.BlockSpec((1, C, thw), lambda n, h: (n, 0, h)),
                  pl.BlockSpec((1, thw, C), lambda n, h: (n, h, 0))],
        out_specs=pl.BlockSpec((1, C, C), lambda n, h: (n, 0, 0)),
        out_shape=jax.ShapeDtypeStruct((N, C, C), jnp.float32),
        compiler_params=pltpu.CompilerParams(
            dimension_semantics=("parallel", "arbitrary")),
    )(xt, x)

    att = pl.pallas_call(
        _cam_softmax_kernel,
        grid=(N,),
        in_specs=[pl.BlockSpec((1, C, C), lambda n: (n, 0, 0))],
        out_specs=pl.BlockSpec((1, C, C), lambda n: (n, 0, 0)),
        out_shape=jax.ShapeDtypeStruct((N, C, C), jnp.bfloat16),
        compiler_params=pltpu.CompilerParams(dimension_semantics=("parallel",)),
    )(energy)
    att_t = jnp.swapaxes(att, 1, 2)                          # (N, C, C), tiny

    out = pl.pallas_call(
        _cam_apply_kernel,
        grid=(N, HWp // thw),
        in_specs=[pl.BlockSpec((1, C, C), lambda n, h: (n, 0, 0)),
                  pl.BlockSpec((1, thw, C), lambda n, h: (n, h, 0)),
                  pl.BlockSpec(memory_space=pltpu.MemorySpace.SMEM)],
        out_specs=pl.BlockSpec((1, thw, C), lambda n, h: (n, h, 0)),
        out_shape=jax.ShapeDtypeStruct((N, HWp, C), jnp.bfloat16),
        compiler_params=pltpu.CompilerParams(
            dimension_semantics=("parallel", "parallel")),
    )(att_t, x, gamma.astype(jnp.float32))
    return out[:, :HW] if HWp != HW else out


# ----------------------------------------------------------------------------
# Bilinear upsample (align_corners=True) as two matmuls (full-extent K blocks)
# ----------------------------------------------------------------------------
def _bilinear_matrix(out_size, in_size):
    A = np.zeros((out_size, in_size), dtype=np.float32)
    if in_size == 1 or out_size == 1:
        A[:, 0] = 1.0
        return A
    sc = (in_size - 1) / (out_size - 1)
    for i in range(out_size):
        src = i * sc
        i0 = min(int(np.floor(src)), in_size - 1)
        i1 = min(i0 + 1, in_size - 1)
        w1 = src - i0
        A[i, i0] += 1.0 - w1
        A[i, i1] += w1
    return A


def upsample_bilinear(x_nhwc, Hout, Wout):
    """(N, hf, wf, C) f32 -> (N, C, Hout, Wout) f32 (NCHW)."""
    N, hf, wf, C = x_nhwc.shape
    ah = jnp.asarray(_bilinear_matrix(Hout, hf))
    aw = jnp.asarray(_bilinear_matrix(Wout, wf))
    t = jnp.transpose(x_nhwc, (0, 2, 3, 1)).reshape(N * wf * C, hf)
    t = linear_pallas(t, ah.T, jnp.zeros((Hout,), jnp.float32),
                      op_dtype=jnp.float32)
    t = t.reshape(N, wf, C, Hout)
    t = jnp.transpose(t, (0, 2, 3, 1)).reshape(N * C * Hout, wf)
    y = linear_pallas(t, aw.T, jnp.zeros((Wout,), jnp.float32),
                      op_dtype=jnp.float32)
    return y.reshape(N, C, Hout, Wout)


# ----------------------------------------------------------------------------
# Backbone stub + parameters + forward
# ----------------------------------------------------------------------------
def space_to_depth_nhwc(x, r):
    N, H, W, C = x.shape
    x = x.reshape(N, H // r, r, W // r, r, C)
    x = jnp.transpose(x, (0, 1, 3, 2, 4, 5))
    return x.reshape(N, H // r, W // r, r * r * C)


def kaiming(key, shape):
    fan_in = int(np.prod(shape[1:]))
    std = np.sqrt(2.0 / fan_in)
    return jax.random.normal(key, shape, jnp.float32) * std


def init_params(key, in_channels, out_channels, stub_in_channels):
    inter = in_channels // 4
    ks = jax.random.split(key, 12)
    return {
        # backbone stub  # TODO(synk): stands in for the resnet50 base
        "w_base": kaiming(ks[0], (in_channels, stub_in_channels)),
        "b_base": jnp.zeros((in_channels,), jnp.float32),
        # conv2pam / conv2cam (3x3, no bias) + BN + ReLU
        "w_c2pam": kaiming(ks[1], (inter, in_channels, 3, 3)),
        "w_c2cam": kaiming(ks[2], (inter, in_channels, 3, 3)),
        # PAM 1x1 convs
        "wq": kaiming(ks[3], (inter // 8, inter)),
        "bq": jnp.zeros((inter // 8,), jnp.float32),
        "wk": kaiming(ks[4], (inter // 8, inter)),
        "bk": jnp.zeros((inter // 8,), jnp.float32),
        "wv": kaiming(ks[5], (inter, inter)),
        "bv": jnp.zeros((inter,), jnp.float32),
        "gamma_pam": jnp.zeros((1,), jnp.float32),
        "gamma_cam": jnp.zeros((1,), jnp.float32),
        # pam2conv / cam2conv (3x3, no bias) + BN + ReLU
        "w_pam2conv": kaiming(ks[6], (inter, inter, 3, 3)),
        "w_cam2conv": kaiming(ks[7], (inter, inter, 3, 3)),
        # output 1x1 convs (Dropout2d treated as identity)
        "w_pam_out": kaiming(ks[8], (out_channels, inter)),
        "b_pam_out": jnp.zeros((out_channels,), jnp.float32),
        "w_cam_out": kaiming(ks[9], (out_channels, inter)),
        "b_cam_out": jnp.zeros((out_channels,), jnp.float32),
        "w_out": kaiming(ks[10], (out_channels, inter)),
        "b_out": jnp.zeros((out_channels,), jnp.float32),
    }


def danet_forward(params, x):
    N, _, h, w = x.shape
    x_cl = jnp.transpose(x, (0, 2, 3, 1))                    # NCHW -> NHWC once

    # --- backbone stub: space-to-depth(4) + 1x1 conv + ReLU ---
    # TODO(synk): replaces resnet50 `self.base`; produces (N, h/4, w/4, in_ch).
    feat = space_to_depth_nhwc(x_cl, 4)
    _, h4, w4, Cs = feat.shape
    feat = linear_pallas(feat.reshape(N * h4 * w4, Cs),
                         params["w_base"].T, params["b_base"],
                         relu_out=True, out_dtype=jnp.bfloat16)
    feat = feat.reshape(N, h4, w4, -1)
    HW = h4 * w4
    inter = params["w_c2pam"].shape[0]
    out_ch = params["w_pam_out"].shape[0]

    # --- position attention branch ---
    a_raw, sc_a, sh_a = conv3x3_stats(feat, params["w_c2pam"])
    p_att = pam_attention(a_raw.reshape(N, HW, inter), sc_a, sh_a,
                          params["wq"], params["bq"],
                          params["wk"], params["bk"],
                          params["wv"], params["bv"], params["gamma_pam"])
    b_raw, sc_b, sh_b = conv3x3_stats(p_att.reshape(N, h4, w4, inter),
                                      params["w_pam2conv"])

    # --- channel attention branch ---
    c_raw, sc_c, sh_c = conv3x3_stats(feat, params["w_c2cam"])
    c_att = cam_attention(c_raw.reshape(N, HW, inter), sc_c, sh_c,
                          params["gamma_cam"])
    d_raw, sc_d, sh_d = conv3x3_stats(c_att.reshape(N, h4, w4, inter),
                                      params["w_cam2conv"])

    # --- fused output heads: [conv_pam_out | conv_out] and [conv_cam_out | conv_out]
    #     BN+ReLU of pam2conv / cam2conv fused as the matmul prologue ---
    W1 = jnp.concatenate([params["w_pam_out"].T, params["w_out"].T], axis=1)
    b1 = jnp.concatenate([params["b_pam_out"], params["b_out"]])
    W2 = jnp.concatenate([params["w_cam_out"].T, params["w_out"].T], axis=1)
    b2 = jnp.concatenate([params["b_cam_out"], jnp.zeros_like(params["b_out"])])

    y1 = linear_pallas(b_raw.reshape(N * HW, inter), W1, b1,
                       scale=sc_b, shift=sh_b, out_dtype=jnp.float32)
    y2 = linear_pallas(d_raw.reshape(N * HW, inter), W2, b2,
                       scale=sc_d, shift=sh_d, out_dtype=jnp.float32)

    sa = y1[:, :out_ch].reshape(N, h4, w4, out_ch)
    sc_o = y2[:, :out_ch].reshape(N, h4, w4, out_ch)
    head = (y1[:, out_ch:] + y2[:, out_ch:]).reshape(N, h4, w4, out_ch)

    output = upsample_bilinear(head, h, w)                   # NCHW f32
    sa_output = jnp.transpose(sa, (0, 3, 1, 2))
    sc_output = jnp.transpose(sc_o, (0, 3, 1, 2))
    return output, sa_output, sc_output


if __name__ == "__main__":
    key = jax.random.PRNGKey(0)
    k_x, k_p = jax.random.split(key)

    # small synthetic config (original: in_channels=2048, backbone=resnet50)
    N, Cin_img, H, W = 2, 3, 32, 32
    in_channels, out_channels = 128, 4
    stub_in_channels = Cin_img * 4 * 4                       # after space-to-depth(4)

    x = jax.random.normal(k_x, (N, Cin_img, H, W), jnp.float32)
    params = init_params(k_p, in_channels, out_channels, stub_in_channels)

    output, sa_output, sc_output = danet_forward(params, x)
    jax.block_until_ready((output, sa_output, sc_output))

    assert output.shape == (N, out_channels, H, W)
    assert sa_output.shape == (N, out_channels, H // 4, W // 4)
    assert sc_output.shape == (N, out_channels, H // 4, W // 4)
    assert bool(jnp.all(jnp.isfinite(output)))
    print("KERNEL_OK")
</pallas_src>

<mosaic_0001>
module attributes {stable_mosaic.version = 11 : i64} {
  func.func @_matmul_kernel(%arg0: i32, %arg1: i32, %arg2: i32, %arg3: memref<128x48xbf16, #tpu.memory_space<vmem>>, %arg4: memref<48x128xbf16, #tpu.memory_space<vmem>>, %arg5: memref<1x128xf32, #tpu.memory_space<vmem>>, %arg6: memref<128x128xbf16, #tpu.memory_space<vmem>>, %arg7: memref<128x128xf32, #tpu.memory_space<vmem>>) attributes {dimension_semantics = [#tpu.dimension_semantics<parallel>, #tpu.dimension_semantics<parallel>, #tpu.dimension_semantics<arbitrary>], iteration_bounds = array<i64: 1, 1, 1>, scalar_prefetch = 0 : i64, scratch_operands = 1 : i64, tpu.core_type = #tpu.core_type<tc>, window_params = [{transform_indices = @transform_0, window_bounds = array<i64: 128, 48>}, {transform_indices = @transform_1, window_bounds = array<i64: 48, 128>}, {transform_indices = @transform_2, window_bounds = array<i64: 1, 128>}, {transform_indices = @transform_3, window_bounds = array<i64: 128, 128>}]} {
    %c0_i32 = arith.constant 0 : i32
    %0 = arith.cmpi eq, %arg2, %c0_i32 : i32
    %1 = arith.extui %0 : i1 to i32
    %c0_i32_0 = arith.constant 0 : i32
    %2 = arith.cmpi ne, %1, %c0_i32_0 : i32
    scf.if %2 {
      %cst_10 = arith.constant 0.000000e+00 : f32
      %12 = vector.broadcast %cst_10 : f32 to vector<128x128xf32>
      %c0_11 = arith.constant 0 : index
      %c0_12 = arith.constant 0 : index
      %13 = vector.load %arg7[%c0_11, %c0_12] : memref<128x128xf32, #tpu.memory_space<vmem>>, vector<128x128xf32>
      tpu.vector_store %arg7[%c0_11, %c0_12], %12 {strides = array<i32>} : memref<128x128xf32, #tpu.memory_space<vmem>>, vector<128x128xf32>,
    } else {
    }
    %c0 = arith.constant 0 : index
    %c0_1 = arith.constant 0 : index
    %3 = vector.load %arg3[%c0, %c0_1] : memref<128x48xbf16, #tpu.memory_space<vmem>>, vector<128x48xbf16>
    %c0_2 = arith.constant 0 : index
    %c0_3 = arith.constant 0 : index
    %4 = vector.load %arg7[%c0_2, %c0_3] : memref<128x128xf32, #tpu.memory_space<vmem>>, vector<128x128xf32>
    %c0_4 = arith.constant 0 : index
    %c0_5 = arith.constant 0 : index
    %5 = vector.load %arg4[%c0_4, %c0_5] : memref<48x128xbf16, #tpu.memory_space<vmem>>, vector<48x128xbf16>
    %cst = arith.constant dense<0.000000e+00> : vector<128x128xf32>
    %6 = tpu.matmul %3, %5, %cst {dimension_numbers = #tpu.dot_dimension_numbers<[1], [0], [0], [1], [0, 0, 1, 1], [], []>} : vector<128x48xbf16>, vector<48x128xbf16>, vector<128x128xf32> -> vector<128x128xf32>
    %7 = arith.addf %4, %6 : vector<128x128xf32>
    %c0_6 = arith.constant 0 : index
    %c0_7 = arith.constant 0 : index
    %8 = vector.load %arg7[%c0_6, %c0_7] : memref<128x128xf32, #tpu.memory_space<vmem>>, vector<128x128xf32>
    tpu.vector_store %arg7[%c0_6, %c0_7], %7 {strides = array<i32>} : memref<128x128xf32, #tpu.memory_space<vmem>>, vector<128x128xf32>,
    %c0_i32_8 = arith.constant 0 : i32
    %9 = arith.cmpi eq, %arg2, %c0_i32_8 : i32
    %10 = arith.extui %9 : i1 to i32
    %c0_i32_9 = arith.constant 0 : i32
    %11 = arith.cmpi ne, %10, %c0_i32_9 : i32
    scf.if %11 {
      %c0_10 = arith.constant 0 : index
      %c0_11 = arith.constant 0 : index
      %12 = vector.load %arg7[%c0_10, %c0_11] : memref<128x128xf32, #tpu.memory_space<vmem>>, vector<128x128xf32>
      %c0_12 = arith.constant 0 : index
      %c0_13 = arith.constant 0 : index
      %13 = vector.load %arg5[%c0_12, %c0_13] : memref<1x128xf32, #tpu.memory_space<vmem>>, vector<1x128xf32>
      %14 = vector.broadcast %13 : vector<1x128xf32> to vector<128x128xf32>
      %15 = arith.addf %12, %14 : vector<128x128xf32>
      %cst_14 = arith.constant 0.000000e+00 : f32
      %16 = vector.broadcast %cst_14 : f32 to vector<128x128xf32>
      %17 = arith.maximumf %15, %16 : vector<128x128xf32>
      %18 = arith.truncf %17 : vector<128x128xf32> to vector<128x128xbf16>
      %c0_15 = arith.constant 0 : index
      %c0_16 = arith.constant 0 : index
      %19 = vector.load %arg6[%c0_15, %c0_16] : memref<128x128xbf16, #tpu.memory_space<vmem>>, vector<128x128xbf16>
      tpu.vector_store %arg6[%c0_15, %c0_16], %18 {strides = array<i32>} : memref<128x128xbf16, #tpu.memory_space<vmem>>, vector<128x128xbf16>,
    } else {
    }
    return
  }
  func.func @transform_0(%arg0: i32, %arg1: i32, %arg2: i32) -> (i32, i32) {
    %c0_i32 = arith.constant 0 : i32
    return %arg0, %arg2 : i32, i32
  }
  func.func @transform_1(%arg0: i32, %arg1: i32, %arg2: i32) -> (i32, i32) {
    %c0_i32 = arith.constant 0 : i32
    return %arg2, %arg1 : i32, i32
  }
  func.func @transform_2(%arg0: i32, %arg1: i32, %arg2: i32) -> (i32, i32) {
    %c0_i32 = arith.constant 0 : i32
    %c0_i32_0 = arith.constant 0 : i32
    return %c0_i32, %arg1 : i32, i32
  }
  func.func @transform_3(%arg0: i32, %arg1: i32, %arg2: i32) -> (i32, i32) {
    %c0_i32 = arith.constant 0 : i32
    return %arg0, %arg1 : i32, i32
  }
}

</mosaic_0001>

<bundles_post_ra>
// kernel: tpu_custom_call.1
= control target key start
LH: loop header
LB: loop body
LE: loop exit
PB: predicated region body
PF: predicated region fallthrough
CT: control target
= control target key end

     0   :  { %vm132_vm0 = vcmask 392192   ;;  %s684_s0 = inlined_call_operand.vmem [shape: bf16[128,48], index: 0, kind: input, shape index: {}]   ;;  %s685_s1 = inlined_call_operand.vmem [shape: bf16[48,128], index: 1, kind: input, shape index: {}]   ;;  %s686_s2 = inlined_call_operand.vmem [shape: f32[1,128], index: 2, kind: input, shape index: {}]   ;;  %s687_s3 = inlined_call_operand.hbm [shape: bf16[128,128], index: 3, kind: output, shape index: {}]  }
   0x1   :  { %v581_v0 = vld [vmem:[%s685_s1 + $0x10] sm:$0xff]   ;;  %v582_v1 = vld [vmem:[%s685_s1 + $0x8] sm:$0xff]   ;;  %v583_v2 = vld [vmem:[%s685_s1] sm:$0xff]  }
   0x2   :  { %550 = vmatprep.subr.bf16.mxu0 %v581_v0  ;;  %572 = vmatprep.subr.bf16.mxu1 %v581_v0  ;;  %v584_v3 = vld [vmem:[%s684_s0] sm:$0xff]   ;;  %v586_v5 = vld [vmem:[%s684_s0 + $0x8] sm:$0xff]   ;;  %v588_v7 = vld [vmem:[%s684_s0 + $0x10] sm:$0xff]  }
   0x3   :  { %551 = vmatpush3.bf16.msra.mxu0 %v581_v0  ;;  %575 = vmatpush3.bf16.msra.mxu1 %v581_v0  ;;  %v585_v4 = vld [vmem:[%s684_s0 + $0x20] sm:$0xff]   ;;  %v587_v6 = vld [vmem:[%s684_s0 + $0x28] sm:$0xff]   ;;  %v589_v8 = vld [vmem:[%s684_s0 + $0x30] sm:$0xff]  }
   0x4   :  { %552 = vmatprep.subr.bf16.mxu0 %v582_v1  ;;  %573 = vmatprep.subr.bf16.mxu1 %v582_v1 }
   0x5   :  { %556 = vmatprep.mubr.msk.bf16.mxu0 %vm132_vm0, %v584_v3  ;;  %564 = vmatprep.mubr.msk.bf16.mxu1 %vm132_vm0, %v585_v4 }
   0x7   :  { %553 = vmatpush3.bf16.msra.mxu0 %v582_v1  ;;  %576 = vmatpush3.bf16.msra.mxu1 %v582_v1 }
   0x8   :  { %554 = vmatprep.subr.bf16.mxu0 %v583_v2  ;;  %574 = vmatprep.subr.bf16.mxu1 %v583_v2 }
   0xb   :  { %555 = vmatpush3.bf16.msra.mxu0 %v583_v2  ;;  %577 = vmatpush3.bf16.msra.mxu1 %v583_v2 }
   0xc   :  { %8 = vsyncpa [#allocation4], 0  ;;  %v590_v9 = vld [vmem:[%s684_s0 + $0x18] sm:$0xff]   ;;  %v459_v11 = vld [vmem:[%s686_s2] ss:$0 sm:$0xff] }
   0xd   :  { %v591_v10 = vld [vmem:[%s684_s0 + $0x38] sm:$0xff]   ;;  %s614_s0 = smov [#allocation3]  }
   0xe   :  { %557 = vmatmul.mubr.msk.bf16.vlgmr.msra.gmra.mxu0 %vm132_vm0, %v586_v5  ;;  %565 = vmatmul.mubr.msk.bf16.vlgmr.msra.gmra.mxu1 %vm132_vm0, %v587_v6  ;;  %s429_s2 = sshll.u32 %s614_s0, 4  ;;  %s430_s2 = int_to_ptr.vmem [resolvable:$true] %s429_s2 }
   0xf   :  { %560 = vmatprep.mubr.msk.bf16.mxu0 %vm132_vm0, %v588_v7  ;;  %568 = vmatprep.mubr.msk.bf16.mxu1 %vm132_vm0, %v589_v8  ;;  %s592_s8 = scalar_lea.vmem %s430_s2, 1024  ;;  %p597_p1 = scmp.lt.s32.totalorder %s430_s2, %s430_s2 }
  0x10   :  { %p593_p0 = scmp.ne.s32.totalorder %s430_s2, %s592_s8  ;;  %p598_p2 = scmp.lt.s32.totalorder %s592_s8, %s592_s8 }
  0x12   :  { %p599_p3 = por %p598_p2, %p597_p1 }
  0x14   :  { %p600_p4 = pnand %p599_p3, %p593_p0 }
  0x16   :  { %561 = vmatmul.mubr.msk.bf16.gmra.mxu0 %vm132_vm0, %v590_v9  ;;  %569 = vmatmul.mubr.msk.bf16.gmra.mxu1 %vm132_vm0, %v591_v10 }
  0xce   :  { %v558_v12 = vpop.f32.mrf.mxu0  ;;  %v566_v13 = vpop.f32.mrf.mxu1 }
  0xcf   :  { %v314_v14 = vadd.f32 %v558_v12, %v459_v11  ;;  %v322_v15 = vadd.f32 %v566_v13, %v459_v11 }
  0xd0   :  { %v191_v16 = vpop.f32.mrf.mxu0  ;;  %v223_v17 = vpop.f32.mrf.mxu1 }
  0xd1   :  { %v312_v18 = vadd.f32 %v459_v11, %v191_v16  ;;  %v320_v19 = vadd.f32 %v459_v11, %v223_v17  ;;  %v330_v24 = vmax.f32 %v314_v14, 0.0  ;;  %v338_v25 = vmax.f32 %v322_v15, 0.0 }
  0xd2   :  { %v559_v20 = vpop.f32.mrf.mxu0  ;;  %v567_v21 = vpop.f32.mrf.mxu1 }
  0xd3   :  { %v315_v22 = vadd.f32 %v559_v20, %v459_v11  ;;  %v323_v23 = vadd.f32 %v567_v21, %v459_v11  ;;  %v328_v32 = vmax.f32 %v312_v18, 0.0  ;;  %v336_v33 = vmax.f32 %v320_v19, 0.0 }
  0xd4   :  { %v194_v26 = vpop.f32.mrf.mxu0  ;;  %v226_v27 = vpop.f32.mrf.mxu1 }
  0xd5   :  { %v331_v28 = vmax.f32 %v315_v22, 0.0  ;;  %v339_v29 = vmax.f32 %v323_v23, 0.0  ;;  %v313_v30 = vadd.f32 %v459_v11, %v194_v26  ;;  %v321_v31 = vadd.f32 %v459_v11, %v226_v27 }
  0xd6   :  { %v562_v34 = vpop.f32.mrf.mxu0  ;;  %v570_v35 = vpop.f32.mrf.mxu1 }
  0xd7   :  { %v500_v36 = vpack.c.bf16 %v331_v28, %v330_v24  ;;  %v520_v37 = vpack.c.bf16 %v339_v29, %v338_v25  ;;  %v329_v38 = vmax.f32 %v313_v30, 0.0  ;;  %v337_v39 = vmax.f32 %v321_v31, 0.0 }
  0xd8   :  { %v318_v40 = vadd.f32 %v562_v34, %v459_v11  ;;  %v326_v41 = vadd.f32 %v570_v35, %v459_v11  ;;  %v207_v42 = vpop.f32.mrf.mxu0  ;;  %v239_v43 = vpop.f32.mrf.mxu1 }
  0xd9   :  { %532 = vst [vmem:[#allocation3 + $0x8] sm:$0xff] %v500_v36   ;;  %536 = vst [vmem:[#allocation3 + $0x28] sm:$0xff] %v520_v37   ;;  %v495_v44 = vpack.c.bf16 %v329_v38, %v328_v32  ;;  %v515_v45 = vpack.c.bf16 %v337_v39, %v336_v33  ;;  %v316_v46 = vadd.f32 %v459_v11, %v207_v42 }
  0xda   :  { %v324_v47 = vadd.f32 %v459_v11, %v239_v43  ;;  %v563_v48 = vpop.f32.mrf.mxu0  ;;  %v571_v49 = vpop.f32.mrf.mxu1  ;;  %v334_v52 = vmax.f32 %v318_v40, 0.0  ;;  %v342_v53 = vmax.f32 %v326_v41, 0.0 }
  0xdb   :  { %496 = vst [vmem:[#allocation3] sm:$0xff] %v495_v44   ;;  %535 = vst [vmem:[#allocation3 + $0x20] sm:$0xff] %v515_v45   ;;  %v319_v50 = vadd.f32 %v563_v48, %v459_v11  ;;  %v327_v51 = vadd.f32 %v571_v49, %v459_v11  ;;  %v332_v60 = vmax.f32 %v316_v46, 0.0 }
  0xdc   :  { %v210_v54 = vpop.f32.mrf.mxu0  ;;  %v242_v55 = vpop.f32.mrf.mxu1  ;;  %v340_v61 = vmax.f32 %v324_v47, 0.0 }
  0xdd   :  { %v335_v56 = vmax.f32 %v319_v50, 0.0  ;;  %v343_v57 = vmax.f32 %v327_v51, 0.0  ;;  %v317_v58 = vadd.f32 %v459_v11, %v210_v54  ;;  %v325_v59 = vadd.f32 %v459_v11, %v242_v55 }
  0xdf   :  { %v510_v62 = vpack.c.bf16 %v335_v56, %v334_v52  ;;  %v530_v63 = vpack.c.bf16 %v343_v57, %v342_v53  ;;  %v333_v0 = vmax.f32 %v317_v58, 0.0  ;;  %v341_v1 = vmax.f32 %v325_v59, 0.0 }
  0xe1   :  { %534 = vst [vmem:[#allocation3 + $0x18] sm:$0xff] %v510_v62   ;;  %538 = vst [vmem:[#allocation3 + $0x38] sm:$0xff] %v530_v63   ;;  %v505_v2 = vpack.c.bf16 %v333_v0, %v332_v60  ;;  %v525_v3 = vpack.c.bf16 %v341_v1, %v340_v61 }
  0xe3   :  { %533 = vst [vmem:[#allocation3 + $0x10] sm:$0xff] %v505_v2   ;;  %537 = vst [vmem:[#allocation3 + $0x30] sm:$0xff] %v525_v3  }
  0xe4   :  { %603 = shalt.err (!%p600_p4)
}
  0xe5   :  { %s615_s9 = smov 64   ;;  %s616_s10 = smov 4  }
  0xe6   :  { %435 = dma.vmem_to_hbm [thread:$0]  %s430_s2, 1024, %s687_s3, [#allocation4], %s615_s9, %s615_s9, %s616_s10  }
  0xe7   :  { %612 = dma.done.wait [#allocation4], 1024  }
  0xe8   :  { %613 = vsyncadd [#allocation4], 4294966272 }
  0xe9   :  { %439 = vsyncpa [#allocation4], 1 }

</bundles_post_ra>
